<compile_context>
chip_gen: v7x
topology: tpu7x:2x2x1
jax: 0.10.0
libtpu: 0.0.40
codegen_flags: <defaults>
</compile_context>

<pallas_src>
import math

import jax
import jax.numpy as jnp
import numpy as np
from jax import lax
from jax.experimental import pallas as pl
from jax.experimental.pallas import tpu as pltpu


def _round_up(x, m):
    return (x + m - 1) // m * m


def cross_attention(x_q, x_kv, wq, bq, wk, bk, wv, bv, *, tq_max=128, tk_max=256):
    """Cross attention.

    x_q: (B, Sq, D); x_kv: (B, Skv, D); weights PyTorch-style (out, in) = (D, D);
    biases (D,).  Returns (B, Sq, D) in x_q.dtype.
    """
    B, Sq, D = x_q.shape
    Bk, Skv, Dk = x_kv.shape
    assert Bk == B and Dk == D

    compute_dtype = x_q.dtype
    scale = 1.0 / math.sqrt(D)  # based on the true d_model, before padding

    # --- wrapper-side weight prep (one-time, XLA-side) ------------------------
    # Pre-transpose (out,in) -> (in,out) so the kernel does x @ W (no .T inside),
    # and fold the softmax scale into the Q path.
    wq_t = (wq.astype(jnp.float32) * scale).T            # (D, D) in->out, scaled
    bq_s = bq.astype(jnp.float32) * scale                # (D,)
    wk_t = wk.astype(jnp.float32).T
    wv_t = wv.astype(jnp.float32).T

    # --- tiling / padding ------------------------------------------------------
    Dp = _round_up(D, 128)                               # lane-dense feature dim
    tq = min(tq_max, _round_up(Sq, 8))
    tk = min(tk_max, _round_up(Skv, 8))
    Sq_pad = _round_up(Sq, tq)
    Skv_pad = _round_up(Skv, tk)
    nq = Sq_pad // tq
    nk = Skv_pad // tk

    def pad3(x, s_to, d_to):
        return jnp.pad(x, ((0, 0), (0, s_to - x.shape[1]), (0, d_to - x.shape[2])))

    def pad2(w, r_to, c_to):
        return jnp.pad(w, ((0, r_to - w.shape[0]), (0, c_to - w.shape[1])))

    xq_p = pad3(x_q, Sq_pad, Dp).astype(compute_dtype)
    xkv_p = pad3(x_kv, Skv_pad, Dp).astype(compute_dtype)

    wq_p = pad2(wq_t, Dp, Dp).astype(compute_dtype)                       # (Dp, Dp)
    wkv_p = jnp.concatenate([pad2(wk_t, Dp, Dp), pad2(wv_t, Dp, Dp)],
                            axis=1).astype(compute_dtype)                 # (Dp, 2*Dp)
    bq_p = jnp.pad(bq_s, (0, Dp - D)).reshape(1, Dp).astype(jnp.float32)
    bkv_p = jnp.concatenate(
        [jnp.pad(bk.astype(jnp.float32), (0, Dp - D)),
         jnp.pad(bv.astype(jnp.float32), (0, Dp - D))]).reshape(1, 2 * Dp)

    # --- kernel ----------------------------------------------------------------
    def kernel(xq_ref, xkv_ref, wq_ref, bq_ref, wkv_ref, bkv_ref, out_ref,
               q_scr, m_scr, l_scr, acc_scr):
        ki = pl.program_id(2)
        nk_ = pl.num_programs(2)

        @pl.when(ki == 0)
        def _init():
            # Project the Q tile once per (batch, q-tile); softmax scale already
            # folded into wq/bq.
            q = jnp.dot(xq_ref[...], wq_ref[...],
                        preferred_element_type=jnp.float32) + bq_ref[...]
            q_scr[...] = q.astype(q_scr.dtype)
            m_scr[...] = jnp.full(m_scr.shape, -jnp.inf, dtype=m_scr.dtype)
            l_scr[...] = jnp.zeros(l_scr.shape, dtype=l_scr.dtype)
            acc_scr[...] = jnp.zeros(acc_scr.shape, dtype=acc_scr.dtype)

        # Fused K/V projection for this kv tile: one (tk, Dp) x (Dp, 2*Dp) matmul.
        kv = jnp.dot(xkv_ref[...], wkv_ref[...],
                     preferred_element_type=jnp.float32) + bkv_ref[...]
        k = kv[:, :Dp].astype(compute_dtype)
        v = kv[:, Dp:].astype(compute_dtype)

        # Scores: contract the feature dim of Q and K directly (no K transpose).
        s = lax.dot_general(q_scr[...], k,
                            dimension_numbers=(((1,), (1,)), ((), ())),
                            preferred_element_type=jnp.float32)  # (tq, tk)

        if Skv_pad != Skv:  # static: mask padded kv positions only when needed
            kv_pos = ki * tk + lax.broadcasted_iota(jnp.int32, s.shape, 1)
            s = jnp.where(kv_pos < Skv, s, -jnp.inf)

        # Online (flash) softmax update, f32 state.
        m_prev = m_scr[...]
        m_new = jnp.maximum(m_prev, jnp.max(s, axis=-1, keepdims=True))
        alpha = jnp.exp(m_prev - m_new)
        p = jnp.exp(s - m_new)
        l_scr[...] = alpha * l_scr[...] + jnp.sum(p, axis=-1, keepdims=True)
        acc_scr[...] = alpha * acc_scr[...] + jnp.dot(
            p.astype(compute_dtype), v, preferred_element_type=jnp.float32)
        m_scr[...] = m_new

        @pl.when(ki == nk_ - 1)
        def _finalize():
            inv_l = pl.reciprocal(l_scr[...], approx=True)
            out_ref[...] = (acc_scr[...] * inv_l).astype(out_ref.dtype)

    seq_q_spec = pl.BlockSpec((pl.Squeezed(), tq, Dp), lambda b, qi, ki: (b, qi, 0))
    seq_kv_spec = pl.BlockSpec((pl.Squeezed(), tk, Dp), lambda b, qi, ki: (b, ki, 0))

    out_p = pl.pallas_call(
        kernel,
        out_shape=jax.ShapeDtypeStruct((B, Sq_pad, Dp), compute_dtype),
        grid_spec=pltpu.PrefetchScalarGridSpec(
            num_scalar_prefetch=0,
            grid=(B, nq, nk),
            in_specs=[
                seq_q_spec,                                               # x_q
                seq_kv_spec,                                              # x_kv
                pl.BlockSpec((Dp, Dp), lambda b, qi, ki: (0, 0)),         # Wq.T (scaled)
                pl.BlockSpec((1, Dp), lambda b, qi, ki: (0, 0)),          # bq (scaled)
                pl.BlockSpec((Dp, 2 * Dp), lambda b, qi, ki: (0, 0)),     # [Wk.T | Wv.T]
                pl.BlockSpec((1, 2 * Dp), lambda b, qi, ki: (0, 0)),      # [bk | bv]
            ],
            out_specs=pl.BlockSpec((pl.Squeezed(), tq, Dp),
                                   lambda b, qi, ki: (b, qi, 0)),
            scratch_shapes=[
                pltpu.VMEM((tq, Dp), compute_dtype),   # projected Q tile
                pltpu.VMEM((tq, 1), jnp.float32),      # running max
                pltpu.VMEM((tq, 1), jnp.float32),      # running denominator
                pltpu.VMEM((tq, Dp), jnp.float32),     # f32 output accumulator
            ],
        ),
        compiler_params=pltpu.CompilerParams(
            dimension_semantics=("parallel", "parallel", "arbitrary"),
            vmem_limit_bytes=64 * 1024 * 1024),
    )(xq_p, xkv_p, wq_p, bq_p, wkv_p, bkv_p)

    return out_p[:, :Sq, :D]


def _reference(x_q, x_kv, wq, bq, wk, bk, wv, bv):
    q = x_q @ wq.T + bq
    k = x_kv @ wk.T + bk
    v = x_kv @ wv.T + bv
    scores = jnp.einsum("bqd,bkd->bqk", q, k) / math.sqrt(q.shape[-1])
    w = jax.nn.softmax(scores, axis=-1)
    return jnp.einsum("bqk,bkd->bqd", w, v)


if __name__ == "__main__":
    B, Sq, Skv, D = 2, 8, 8, 32

    key = jax.random.PRNGKey(0)
    k_xq, k_xkv, k_wq, k_bq, k_wk, k_bk, k_wv, k_bv = jax.random.split(key, 8)

    x_q = jax.random.normal(k_xq, (B, Sq, D), dtype=jnp.float32)
    x_kv = jax.random.normal(k_xkv, (B, Skv, D), dtype=jnp.float32)

    # Deterministic "Linear" parameter init (PyTorch-style uniform bound).
    bound = 1.0 / math.sqrt(D)
    wq = jax.random.uniform(k_wq, (D, D), jnp.float32, -bound, bound)
    bq = jax.random.uniform(k_bq, (D,), jnp.float32, -bound, bound)
    wk = jax.random.uniform(k_wk, (D, D), jnp.float32, -bound, bound)
    bk = jax.random.uniform(k_bk, (D,), jnp.float32, -bound, bound)
    wv = jax.random.uniform(k_wv, (D, D), jnp.float32, -bound, bound)
    bv = jax.random.uniform(k_bv, (D,), jnp.float32, -bound, bound)

    out = cross_attention(x_q, x_kv, wq, bq, wk, bk, wv, bv)
    out = jax.block_until_ready(out)

    ref = _reference(x_q, x_kv, wq, bq, wk, bk, wv, bv)
    # Tolerance slightly loosened vs 1e-5 because the softmax denominator uses the
    # EUP approximate reciprocal (pl.reciprocal(approx=True)).
    np.testing.assert_allclose(np.asarray(out), np.asarray(ref), rtol=5e-3, atol=5e-3)

    print("KERNEL_OK")
</pallas_src>

<mosaic_0001>
module attributes {stable_mosaic.version = 11 : i64} {
  func.func @kernel(%arg0: i32, %arg1: i32, %arg2: i32, %arg3: memref<1x8x128xf32, #tpu.memory_space<vmem>>, %arg4: memref<1x8x128xf32, #tpu.memory_space<vmem>>, %arg5: memref<128x128xf32, #tpu.memory_space<vmem>>, %arg6: memref<1x128xf32, #tpu.memory_space<vmem>>, %arg7: memref<128x256xf32, #tpu.memory_space<vmem>>, %arg8: memref<1x256xf32, #tpu.memory_space<vmem>>, %arg9: memref<1x8x128xf32, #tpu.memory_space<vmem>>, %arg10: memref<8x128xf32, #tpu.memory_space<vmem>>, %arg11: memref<8x1xf32, #tpu.memory_space<vmem>>, %arg12: memref<8x1xf32, #tpu.memory_space<vmem>>, %arg13: memref<8x128xf32, #tpu.memory_space<vmem>>) attributes {dimension_semantics = [#tpu.dimension_semantics<parallel>, #tpu.dimension_semantics<parallel>, #tpu.dimension_semantics<arbitrary>], iteration_bounds = array<i64: 2, 1, 1>, scalar_prefetch = 0 : i64, scratch_operands = 4 : i64, tpu.core_type = #tpu.core_type<tc>, window_params = [{transform_indices = @transform_0, window_bounds = array<i64: 1, 8, 128>}, {transform_indices = @transform_1, window_bounds = array<i64: 1, 8, 128>}, {pipeline_mode = #tpu.pipeline_mode<synchronous>, transform_indices = @transform_2, window_bounds = array<i64: 128, 128>}, {pipeline_mode = #tpu.pipeline_mode<synchronous>, transform_indices = @transform_3, window_bounds = array<i64: 1, 128>}, {pipeline_mode = #tpu.pipeline_mode<synchronous>, transform_indices = @transform_4, window_bounds = array<i64: 128, 256>}, {pipeline_mode = #tpu.pipeline_mode<synchronous>, transform_indices = @transform_5, window_bounds = array<i64: 1, 256>}, {transform_indices = @transform_6, window_bounds = array<i64: 1, 8, 128>}]} {
    %c0_i32 = arith.constant 0 : i32
    %0 = arith.cmpi eq, %arg2, %c0_i32 : i32
    %1 = arith.extui %0 : i1 to i32
    %c0_i32_0 = arith.constant 0 : i32
    %2 = arith.cmpi ne, %1, %c0_i32_0 : i32
    scf.if %2 {
      %c0_27 = arith.constant 0 : index
      %c0_28 = arith.constant 0 : index
      %c0_29 = arith.constant 0 : index
      %39 = vector.load %arg3[%c0_27, %c0_28, %c0_29] : memref<1x8x128xf32, #tpu.memory_space<vmem>>, vector<1x8x128xf32>
      %40 = vector.shape_cast %39 : vector<1x8x128xf32> to vector<8x128xf32>
      %c0_30 = arith.constant 0 : index
      %c0_31 = arith.constant 0 : index
      %41 = vector.load %arg5[%c0_30, %c0_31] : memref<128x128xf32, #tpu.memory_space<vmem>>, vector<128x128xf32>
      %cst_32 = arith.constant dense<0.000000e+00> : vector<8x128xf32>
      %42 = tpu.matmul %40, %41, %cst_32 {dimension_numbers = #tpu.dot_dimension_numbers<[1], [0], [0], [1], [0, 0, 1, 1], [], []>} : vector<8x128xf32>, vector<128x128xf32>, vector<8x128xf32> -> vector<8x128xf32>
      %c0_33 = arith.constant 0 : index
      %c0_34 = arith.constant 0 : index
      %43 = vector.load %arg6[%c0_33, %c0_34] : memref<1x128xf32, #tpu.memory_space<vmem>>, vector<1x128xf32>
      %44 = vector.broadcast %43 : vector<1x128xf32> to vector<8x128xf32>
      %45 = arith.addf %42, %44 : vector<8x128xf32>
      %c0_35 = arith.constant 0 : index
      %c0_36 = arith.constant 0 : index
      %46 = vector.load %arg10[%c0_35, %c0_36] : memref<8x128xf32, #tpu.memory_space<vmem>>, vector<8x128xf32>
      tpu.vector_store %arg10[%c0_35, %c0_36], %45 {strides = array<i32>} : memref<8x128xf32, #tpu.memory_space<vmem>>, vector<8x128xf32>,
      %cst_37 = arith.constant 0xFF800000 : f32
      %47 = vector.broadcast %cst_37 : f32 to vector<8x1xf32>
      %c0_38 = arith.constant 0 : index
      %c0_39 = arith.constant 0 : index
      %48 = vector.load %arg11[%c0_38, %c0_39] : memref<8x1xf32, #tpu.memory_space<vmem>>, vector<8x1xf32>
      tpu.vector_store %arg11[%c0_38, %c0_39], %47 {strides = array<i32>} : memref<8x1xf32, #tpu.memory_space<vmem>>, vector<8x1xf32>,
      %cst_40 = arith.constant 0.000000e+00 : f32
      %49 = vector.broadcast %cst_40 : f32 to vector<8x1xf32>
      %c0_41 = arith.constant 0 : index
      %c0_42 = arith.constant 0 : index
      %50 = vector.load %arg12[%c0_41, %c0_42] : memref<8x1xf32, #tpu.memory_space<vmem>>, vector<8x1xf32>
      tpu.vector_store %arg12[%c0_41, %c0_42], %49 {strides = array<i32>} : memref<8x1xf32, #tpu.memory_space<vmem>>, vector<8x1xf32>,
      %cst_43 = arith.constant 0.000000e+00 : f32
      %51 = vector.broadcast %cst_43 : f32 to vector<8x128xf32>
      %c0_44 = arith.constant 0 : index
      %c0_45 = arith.constant 0 : index
      %52 = vector.load %arg13[%c0_44, %c0_45] : memref<8x128xf32, #tpu.memory_space<vmem>>, vector<8x128xf32>
      tpu.vector_store %arg13[%c0_44, %c0_45], %51 {strides = array<i32>} : memref<8x128xf32, #tpu.memory_space<vmem>>, vector<8x128xf32>,
    } else {
    }
    %c0 = arith.constant 0 : index
    %c0_1 = arith.constant 0 : index
    %c0_2 = arith.constant 0 : index
    %3 = vector.load %arg4[%c0, %c0_1, %c0_2] : memref<1x8x128xf32, #tpu.memory_space<vmem>>, vector<1x8x128xf32>
    %4 = vector.shape_cast %3 : vector<1x8x128xf32> to vector<8x128xf32>
    %c0_3 = arith.constant 0 : index
    %c0_4 = arith.constant 0 : index
    %5 = vector.load %arg7[%c0_3, %c0_4] : memref<128x256xf32, #tpu.memory_space<vmem>>, vector<128x256xf32>
    %cst = arith.constant dense<0.000000e+00> : vector<8x256xf32>
    %6 = tpu.matmul %4, %5, %cst {dimension_numbers = #tpu.dot_dimension_numbers<[1], [0], [0], [1], [0, 0, 1, 1], [], []>} : vector<8x128xf32>, vector<128x256xf32>, vector<8x256xf32> -> vector<8x256xf32>
    %c0_5 = arith.constant 0 : index
    %c0_6 = arith.constant 0 : index
    %7 = vector.load %arg8[%c0_5, %c0_6] : memref<1x256xf32, #tpu.memory_space<vmem>>, vector<1x256xf32>
    %8 = vector.broadcast %7 : vector<1x256xf32> to vector<8x256xf32>
    %9 = arith.addf %6, %8 : vector<8x256xf32>
    %10 = vector.extract_strided_slice %9 {offsets = [0, 0], sizes = [8, 128], strides = [1, 1]} : vector<8x256xf32> to vector<8x128xf32>
    %11 = vector.extract_strided_slice %9 {offsets = [0, 128], sizes = [8, 128], strides = [1, 1]} : vector<8x256xf32> to vector<8x128xf32>
    %c0_7 = arith.constant 0 : index
    %c0_8 = arith.constant 0 : index
    %12 = vector.load %arg10[%c0_7, %c0_8] : memref<8x128xf32, #tpu.memory_space<vmem>>, vector<8x128xf32>
    %cst_9 = arith.constant dense<0.000000e+00> : vector<8x8xf32>
    %13 = tpu.matmul %12, %10, %cst_9 {dimension_numbers = #tpu.dot_dimension_numbers<[1], [1], [0], [0], [0, 0, 1, 0], [], []>} : vector<8x128xf32>, vector<8x128xf32>, vector<8x8xf32> -> vector<8x8xf32>
    %c0_10 = arith.constant 0 : index
    %c0_11 = arith.constant 0 : index
    %14 = vector.load %arg11[%c0_10, %c0_11] : memref<8x1xf32, #tpu.memory_space<vmem>>, vector<8x1xf32>
    %cst_12 = arith.constant dense<0xFF800000> : vector<8xf32>
    %15 = vector.multi_reduction <maximumf>, %13, %cst_12 [1] : vector<8x8xf32> to vector<8xf32>
    %16 = vector.shape_cast %15 : vector<8xf32> to vector<8x1xf32>
    %17 = arith.maximumf %14, %16 : vector<8x1xf32>
    %18 = arith.subf %14, %17 : vector<8x1xf32>
    %19 = math.exp %18 : vector<8x1xf32>
    %20 = vector.broadcast %17 : vector<8x1xf32> to vector<8x8xf32>
    %21 = arith.subf %13, %20 : vector<8x8xf32>
    %22 = math.exp %21 : vector<8x8xf32>
    %c0_13 = arith.constant 0 : index
    %c0_14 = arith.constant 0 : index
    %23 = vector.load %arg12[%c0_13, %c0_14] : memref<8x1xf32, #tpu.memory_space<vmem>>, vector<8x1xf32>
    %24 = arith.mulf %19, %23 : vector<8x1xf32>
    %cst_15 = arith.constant dense<0.000000e+00> : vector<8xf32>
    %25 = vector.multi_reduction <add>, %22, %cst_15 [1] : vector<8x8xf32> to vector<8xf32>
    %26 = vector.shape_cast %25 : vector<8xf32> to vector<8x1xf32>
    %27 = arith.addf %24, %26 : vector<8x1xf32>
    %c0_16 = arith.constant 0 : index
    %c0_17 = arith.constant 0 : index
    %28 = vector.load %arg12[%c0_16, %c0_17] : memref<8x1xf32, #tpu.memory_space<vmem>>, vector<8x1xf32>
    tpu.vector_store %arg12[%c0_16, %c0_17], %27 {strides = array<i32>} : memref<8x1xf32, #tpu.memory_space<vmem>>, vector<8x1xf32>,
    %c0_18 = arith.constant 0 : index
    %c0_19 = arith.constant 0 : index
    %29 = vector.load %arg13[%c0_18, %c0_19] : memref<8x128xf32, #tpu.memory_space<vmem>>, vector<8x128xf32>
    %30 = vector.broadcast %19 : vector<8x1xf32> to vector<8x128xf32>
    %31 = arith.mulf %30, %29 : vector<8x128xf32>
    %cst_20 = arith.constant dense<0.000000e+00> : vector<8x128xf32>
    %32 = tpu.matmul %22, %11, %cst_20 {dimension_numbers = #tpu.dot_dimension_numbers<[1], [0], [0], [1], [0, 0, 1, 1], [], []>} : vector<8x8xf32>, vector<8x128xf32>, vector<8x128xf32> -> vector<8x128xf32>
    %33 = arith.addf %31, %32 : vector<8x128xf32>
    %c0_21 = arith.constant 0 : index
    %c0_22 = arith.constant 0 : index
    %34 = vector.load %arg13[%c0_21, %c0_22] : memref<8x128xf32, #tpu.memory_space<vmem>>, vector<8x128xf32>
    tpu.vector_store %arg13[%c0_21, %c0_22], %33 {strides = array<i32>} : memref<8x128xf32, #tpu.memory_space<vmem>>, vector<8x128xf32>,
    %c0_23 = arith.constant 0 : index
    %c0_24 = arith.constant 0 : index
    %35 = vector.load %arg11[%c0_23, %c0_24] : memref<8x1xf32, #tpu.memory_space<vmem>>, vector<8x1xf32>
    tpu.vector_store %arg11[%c0_23, %c0_24], %17 {strides = array<i32>} : memref<8x1xf32, #tpu.memory_space<vmem>>, vector<8x1xf32>,
    %c0_i32_25 = arith.constant 0 : i32
    %36 = arith.cmpi eq, %arg2, %c0_i32_25 : i32
    %37 = arith.extui %36 : i1 to i32
    %c0_i32_26 = arith.constant 0 : i32
    %38 = arith.cmpi ne, %37, %c0_i32_26 : i32
    scf.if %38 {
      %c0_27 = arith.constant 0 : index
      %c0_28 = arith.constant 0 : index
      %39 = vector.load %arg12[%c0_27, %c0_28] : memref<8x1xf32, #tpu.memory_space<vmem>>, vector<8x1xf32>
      %40 = tpu.reciprocal %39 {approx = true} : vector<8x1xf32> -> vector<8x1xf32>
      %c0_29 = arith.constant 0 : index
      %c0_30 = arith.constant 0 : index
      %41 = vector.load %arg13[%c0_29, %c0_30] : memref<8x128xf32, #tpu.memory_space<vmem>>, vector<8x128xf32>
      %42 = vector.broadcast %40 : vector<8x1xf32> to vector<8x128xf32>
      %43 = arith.mulf %41, %42 : vector<8x128xf32>
      %c0_31 = arith.constant 0 : index
      %c0_32 = arith.constant 0 : index
      %c0_33 = arith.constant 0 : index
      %44 = vector.load %arg9[%c0_31, %c0_32, %c0_33] : memref<1x8x128xf32, #tpu.memory_space<vmem>>, vector<1x8x128xf32>
      %45 = vector.shape_cast %44 : vector<1x8x128xf32> to vector<8x128xf32>
      %46 = vector.shape_cast %43 : vector<8x128xf32> to vector<1x8x128xf32>
      tpu.vector_store %arg9[%c0_31, %c0_32, %c0_33], %46 {strides = array<i32>} : memref<1x8x128xf32, #tpu.memory_space<vmem>>, vector<1x8x128xf32>,
    } else {
    }
    return
  }
  func.func @transform_0(%arg0: i32, %arg1: i32, %arg2: i32) -> (i32, i32, i32) {
    %c0_i32 = arith.constant 0 : i32
    %c0_i32_0 = arith.constant 0 : i32
    return %arg0, %arg1, %c0_i32 : i32, i32, i32
  }
  func.func @transform_1(%arg0: i32, %arg1: i32, %arg2: i32) -> (i32, i32, i32) {
    %c0_i32 = arith.constant 0 : i32
    %c0_i32_0 = arith.constant 0 : i32
    return %arg0, %arg2, %c0_i32 : i32, i32, i32
  }
  func.func @transform_2(%arg0: i32, %arg1: i32, %arg2: i32) -> (i32, i32) {
    %c0_i32 = arith.constant 0 : i32
    %c0_i32_0 = arith.constant 0 : i32
    %c0_i32_1 = arith.constant 0 : i32
    return %c0_i32, %c0_i32_0 : i32, i32
  }
  func.func @transform_3(%arg0: i32, %arg1: i32, %arg2: i32) -> (i32, i32) {
    %c0_i32 = arith.constant 0 : i32
    %c0_i32_0 = arith.constant 0 : i32
    %c0_i32_1 = arith.constant 0 : i32
    return %c0_i32, %c0_i32_0 : i32, i32
  }
  func.func @transform_4(%arg0: i32, %arg1: i32, %arg2: i32) -> (i32, i32) {
    %c0_i32 = arith.constant 0 : i32
    %c0_i32_0 = arith.constant 0 : i32
    %c0_i32_1 = arith.constant 0 : i32
    return %c0_i32, %c0_i32_0 : i32, i32
  }
  func.func @transform_5(%arg0: i32, %arg1: i32, %arg2: i32) -> (i32, i32) {
    %c0_i32 = arith.constant 0 : i32
    %c0_i32_0 = arith.constant 0 : i32
    %c0_i32_1 = arith.constant 0 : i32
    return %c0_i32, %c0_i32_0 : i32, i32
  }
  func.func @transform_6(%arg0: i32, %arg1: i32, %arg2: i32) -> (i32, i32, i32) {
    %c0_i32 = arith.constant 0 : i32
    %c0_i32_0 = arith.constant 0 : i32
    return %arg0, %arg1, %c0_i32 : i32, i32, i32
  }
}

</mosaic_0001>

<bundles_post_ra>
// kernel: tpu_custom_call.1
= control target key start
LH: loop header
LB: loop body
LE: loop exit
PB: predicated region body
PF: predicated region fallthrough
CT: control target
= control target key end

     0   :  { %s1916_s0 = inlined_call_operand.hbm [shape: f32[2,8,128], index: 0, kind: input, shape index: {}]   ;;  %s1917_s1 = inlined_call_operand.hbm [shape: f32[2,8,128], index: 1, kind: input, shape index: {}]   ;;  %s1918_s2 = inlined_call_operand.hbm [shape: f32[128,128], index: 2, kind: input, shape index: {}]   ;;  %s1919_s3 = inlined_call_operand.hbm [shape: f32[1,128], index: 3, kind: input, shape index: {}]   ;;  %s1920_s4 = inlined_call_operand.hbm [shape: f32[128,256], index: 4, kind: input, shape index: {}]   ;;  %s1921_s5 = inlined_call_operand.hbm [shape: f32[1,256], index: 5, kind: input, shape index: {}]   ;;  %s1922_s6 = inlined_call_operand.hbm [shape: f32[2,8,128], index: 6, kind: output, shape index: {}]  }
   0x1   :  { %1928 = sst [smem:[#allocation25_spill]] %s1918_s2 }
   0x2   :  { %1929 = sst [smem:[#allocation26_spill]] %s1919_s3 }
   0x3   :  { %1930 = sst [smem:[#allocation27_spill]] %s1920_s4 }
   0x4   :  { %1931 = sst [smem:[#allocation28_spill]] %s1921_s5 }
   0x5   :  { %11 = vsyncpa [#allocation7], 0 }
   0x6   :  { %13 = vsyncpa [#allocation7 + $0x1], 0 }
   0x7   :  { %14 = vsyncpa [#allocation10], 0 }
   0x8   :  { %16 = vsyncpa [#allocation10 + $0x1], 0 }
   0x9   :  { %17 = vsyncpa [#allocation13], 0 }
   0xa   :  { %18 = vsyncpa [#allocation16], 0 }
   0xb   :  { %19 = vsyncpa [#allocation8], 0 }
   0xc   :  { %21 = vsyncpa [#allocation8 + $0x1], 0  ;;  %s1552_s21 = smov 0   ;;  %s1554_s22 = smov 0  }
   0xd   :  { %s1556_s23 = smov 0   ;;  %s1558_s24 = smov 0  }
   0xe   :  { %s1560_s25 = smov 0   ;;  %s1562_s26 = smov 0  }
   0xf LB: > { %s1583_s27 = sadd.s32 4294967295, %s1499_s26   ;;  %p958_p0 = scmp.ge.s32.totalorder %s1499_s26, 1  ;;  %s1499_s26 = sphi %s1562_s26, %s27_s26   ;;  %s1495_s25 = sphi %s1560_s25, %s1962_s25   ;;  %s1491_s24 = sphi %s1558_s24, %s1961_s24   ;;  %s1487_s23 = sphi %s1556_s23, %s1960_s23   ;;  %s1483_s22 = sphi %s1554_s22, %s1959_s22   ;;  %s1479_s21 = sphi %s1552_s21, %s1958_s21  }
  0x10   : > { %p1923_p1 = scmp.eq.s32.totalorder %s1583_s27, 0  ;;  %p219_p2 = scmp.lt.s32.totalorder %s1499_s26, 3 }
  0x11   : > { %s1501_s29 = smov [#allocation11]   ;;  %s1502_s8 = smov [#allocation12]  }
  0x12   : > { %p1588_p3 = pnand %p958_p0, %p219_p2  ;;  %s231_s30 = sshll.u32 %s1501_s29, 4  ;;  %s1592_s30 = int_to_ptr.vmem [resolvable:$true] %s231_s30 }
  0x13   : > { %s245_s9 = sshll.u32 %s1502_s8, 4  ;;  %s1503_s10 = smov [#allocation14]   ;;  %s1603_s9 = int_to_ptr.vmem [resolvable:$true] %s245_s9 }
  0x14   : > { %s1932_s28 = scalar_select %p1588_p3, 1, 0 }
  0x15   : > { %p1126_p4 = pneg %p1588_p3  ;;  %s1605_s11 = sshll.u32 %s1503_s10, 4  ;;  %s256_s11 = int_to_ptr.vmem [resolvable:$true] %s1605_s11 }
  0x16   : > { %s1934_s2 = sld [smem:[#allocation25_spill]] }
  0x17   : > { %p1599_p6 = pnand %p1126_p4, %p1923_p1 }
  0x19   : > { %p1615_p8 = pneg %p1599_p6 }
  0x1c   : > { %s1229_s14 = scalar_lea.hbm %s1934_s2, 2048 }
  0x1d   : > { %p1230_p7 = scmp.ne.s32.totalorder %s1934_s2, %s1229_s14  ;;  %p1236_p11 = scmp.lt.u32.totalorder %s1229_s14, %s1934_s2 }
  0x1f   : > { %p1232_p9 = pnand %p1615_p8, %p1230_p7 }
  0x21   : > { %p1233_p10 = pneg %p1232_p9 }
  0x23   : > { %p1238_p12 = pnand %p1236_p11, %p1233_p10 }
  0x25   : > { %1241 = shalt.err (!%p1238_p12)
}
  0x26   : > { %s1242_s20 = scalar_lea.vmem %s1592_s30, 2048  ;;  %p1250_p4 = scmp.lt.s32.totalorder %s1592_s30, %s1592_s30 }
  0x27   : > { %p1243_p13 = scmp.ne.s32.totalorder %s1592_s30, %s1242_s20  ;;  %p1251_p5 = scmp.lt.s32.totalorder %s1242_s20, %s1242_s20 }
  0x29   : > { %p1245_p0 = pnand %p1243_p13, %p1615_p8  ;;  %p1252_p7 = por %p1251_p5, %p1250_p4 }
  0x2b   : > { %p1246_p2 = pneg %p1245_p0 }
  0x2d   : > { %p1253_p9 = pnand %p1252_p7, %p1246_p2 }
  0x2f   : > { %1256 = shalt.err (!%p1253_p9)
}
  0x30   : > { %s1504_s29 = smov 128   ;;  %s1505_s8 = smov 8  }
  0x31   : > { %1129 = dma.hbm_to_vmem [thread:$0]  (!%p1599_p6), %s1934_s2, 2048, %s1592_s30, [#allocation10], %s1504_s29, %s1504_s29, %s1505_s8  }
  0x32   : > { %s1936_s3 = sld [smem:[#allocation26_spill]] }
  0x38   : > { %s1257_s15 = scalar_lea.hbm %s1936_s3, 16 }
  0x39   : > { %p1258_p5 = scmp.ne.s32.totalorder %s1936_s3, %s1257_s15  ;;  %p1264_p12 = scmp.lt.u32.totalorder %s1257_s15, %s1936_s3 }
  0x3b   : > { %p1260_p10 = pnand %p1258_p5, %p1615_p8 }
  0x3d   : > { %p1261_p11 = pneg %p1260_p10 }
  0x3f   : > { %p1266_p13 = pnand %p1264_p12, %p1261_p11 }
  0x41   : > { %1269 = shalt.err (!%p1266_p13)
}
  0x42   : > { %s1270_s30 = scalar_lea.vmem %s1603_s9, 16  ;;  %s1277_s29 = scalar_lea.vmem %s1603_s9, 32 }
  0x43   : > { %p1271_p0 = scmp.ne.s32.totalorder %s1603_s9, %s1270_s30  ;;  %p1278_p7 = scmp.lt.s32.totalorder %s1603_s9, %s1603_s9 }
  0x44   : > { %p1279_p9 = scmp.lt.s32.totalorder %s1277_s29, %s1270_s30 }
  0x45   : > { %p1273_p2 = pnand %p1271_p0, %p1615_p8 }
  0x46   : > { %p1280_p5 = por %p1279_p9, %p1278_p7 }
  0x47   : > { %p1274_p4 = pneg %p1273_p2 }
  0x49   : > { %p1281_p10 = pnand %p1280_p5, %p1274_p4 }
  0x4b   : > { %1284 = shalt.err (!%p1281_p10)
}
  0x4c   : > { %1132 = dma.hbm_to_vmem [thread:$0]  (!%p1599_p6), %s1936_s3, 16, %s1603_s9, [#allocation13]  }
  0x4d   : > { %s1937_s4 = sld [smem:[#allocation27_spill]] }
  0x53   : > { %s1285_s14 = scalar_lea.hbm %s1937_s4, 4096 }
  0x54   : > { %p1286_p11 = scmp.ne.s32.totalorder %s1937_s4, %s1285_s14  ;;  %p1292_p0 = scmp.lt.u32.totalorder %s1285_s14, %s1937_s4 }
  0x56   : > { %p1288_p12 = pnand %p1286_p11, %p1615_p8 }
  0x58   : > { %p1289_p13 = pneg %p1288_p12 }
  0x5a   : > { %p1294_p2 = pnand %p1292_p0, %p1289_p13 }
  0x5c   : > { %1297 = shalt.err (!%p1294_p2)
}
  0x5d   : > { %s1298_s20 = scalar_lea.vmem %s256_s11, 4096  ;;  %p1306_p5 = scmp.lt.s32.totalorder %s256_s11, %s256_s11 }
  0x5e   : > { %p1299_p4 = scmp.ne.s32.totalorder %s256_s11, %s1298_s20  ;;  %p1307_p10 = scmp.lt.s32.totalorder %s1298_s20, %s1298_s20 }
  0x60   : > { %p1301_p7 = pnand %p1299_p4, %p1615_p8  ;;  %p1308_p1 = por %p1307_p10, %p1306_p5 }
  0x62   : > { %p1302_p9 = pneg %p1301_p7 }
  0x64   : > { %p1309_p3 = pnand %p1308_p1, %p1302_p9 }
  0x66   : > { %1312 = shalt.err (!%p1309_p3)
}
  0x67   : > { %s1506_s9 = smov 256   ;;  %s1507_s30 = smov 16  }
  0x68   : > { %1135 = dma.hbm_to_vmem [thread:$0]  (!%p1599_p6), %s1937_s4, 4096, %s256_s11, [#allocation13], %s1506_s9, %s1506_s9, %s1507_s30  }
  0x69   : > { %s1508_s10 = smov [#allocation15]   ;;  %s1938_s5 = sld [smem:[#allocation28_spill]] }
  0x6a   : > { %s269_s12 = sshll.u32 %s1508_s10, 4  ;;  %s270_s12 = int_to_ptr.vmem [resolvable:$true] %s269_s12 }
  0x6f   : > { %s1313_s15 = scalar_lea.hbm %s1938_s5, 32 }
  0x70   : > { %p1314_p1 = scmp.ne.s32.totalorder %s1938_s5, %s1313_s15  ;;  %p1320_p12 = scmp.lt.u32.totalorder %s1313_s15, %s1938_s5 }
  0x72   : > { %p1316_p3 = pnand %p1314_p1, %p1615_p8 }
  0x74   : > { %p1317_p11 = pneg %p1316_p3 }
  0x76   : > { %p1322_p13 = pnand %p1320_p12, %p1317_p11 }
  0x78   : > { %1325 = shalt.err (!%p1322_p13)
}
  0x79   : > { %s1326_s11 = scalar_lea.vmem %s270_s12, 32  ;;  %p1334_p7 = scmp.lt.s32.totalorder %s270_s12, %s270_s12 }
  0x7a   : > { %p1327_p0 = scmp.ne.s32.totalorder %s270_s12, %s1326_s11  ;;  %p1335_p9 = scmp.lt.s32.totalorder %s1326_s11, %s1326_s11 }
  0x7c   : > { %p1329_p2 = pnand %p1327_p0, %p1615_p8  ;;  %p1336_p5 = por %p1335_p9, %p1334_p7 }
  0x7e   : > { %p1330_p4 = pneg %p1329_p2 }
  0x80   : > { %p1337_p10 = pnand %p1336_p5, %p1330_p4 }
  0x82   : > { %1340 = shalt.err (!%p1337_p10)
}
  0x83   : > { %1138 = dma.hbm_to_vmem [thread:$0]  (!%p1599_p6), %s1938_s5, 32, %s270_s12, [#allocation16]  }
  0x84   : > { %s957_s17 = sadd.s32 4294967294, %s1499_s26   ;;  %s46_s29 = sadd.s32 1, %s1495_s25 }
  0x85   : > { %p48_p8 = scmp.ge.s32.totalorder %s46_s29, 2  ;;  %s55_s7 = sadd.s32 1, %s1487_s23 }
  0x86   : > { %p62_p1 = scmp.ne.s32.totalorder %s1487_s23, %s1483_s22  ;;  %p63_p3 = scmp.eq.s32.totalorder %s1499_s26, 0 }
  0x87   : > { %s1964_s29 = smov (%p48_p8, %s46_s29), 0  ;;  %p68_p12 = scmp.ne.s32.totalorder %s1483_s22, %s1479_s21 }
  0x88   : > { %1939 = sst [smem:[#allocation24_spill]] %s1964_s29  ;;  %p1705_p11 = por %p63_p3, %p62_p1 }
  0x89   : > { %s50_s10 = ssub.s32 %s1495_s25, %s1964_s29  ;;  %p206_p6 = scmp.eq.s32.totalorder %s1583_s27, 1 }
  0x8a   : > { %p53_p13 = scmp.eq.s32.totalorder %s50_s10, 0  ;;  %p1941_p0 = scmp.eq.s32.totalorder %s1583_s27, 0 }
  0x8b   : > { %p1720_p4 = por %p206_p6, %p62_p1  ;;  %p212_p7 = scmp.eq.s32.totalorder %s957_s17, 1 }
  0x8c   : > { %p1716_p2 = por %p1941_p0, %p68_p12  ;;  %p1154_p5 = scmp.lt.s32.totalorder %s1499_s26, 2 }
  0x8d   : > { %s1943_s13 = scalar_select %p1720_p4, 1, 0 }
  0x8e   : > { %s1942_s12 = scalar_select %p1716_p2, 1, 0 }
  0x8f   : > { %s1725_s14 = scalar_select %p53_p13, %s1487_s23, %s55_s7  }
  0x90   : > { %p1727_p9 = por %p212_p7, %p68_p12  ;;  %s280_s16 = sand.u32 1, %s1487_s23  }
  0x91   : > { %s965_s18 = sshll.u32 %s1495_s25, 7  ;;  %s1734_s19 = sshll.u32 %s280_s16, 3 }
  0x92   : > { %s1944_s15 = scalar_select %p1727_p9, 1, 0 }
  0x93   : > { %s1739_s9 = scalar_lea.hbm %s1916_s0, %s965_s18  ;;  %s284_s30 = scalar_lea.vmem [#allocation6], %s1734_s19 }
  0x94   : > { %s292_s17 = sshll.u32 %s284_s30, 4  ;;  %p1744_p10 = pnand %p1154_p5, %p1705_p11  ;;  %s1748_s17 = int_to_ptr.vmem [resolvable:$true] %s292_s17 }
  0x95   : > { %s1753_s11 = scalar_lea.hbm %s1917_s1, %s965_s18  ;;  %s281_s2 = scalar_lea.sflag [#allocation7], %s280_s16 }
  0x96   : > { %s1341_s3 = scalar_lea.hbm %s1739_s9, 128  ;;  %p1343_p1 = pneg %p1744_p10 }
  0x97   : > { %p1342_p8 = scmp.ne.s32.totalorder %s1739_s9, %s1341_s3  ;;  %s1346_s4 = scalar_lea.hbm %s1916_s0, 256 }
  0x98   : > { %p1347_p12 = scmp.lt.u32.totalorder %s1739_s9, %s1916_s0  ;;  %p1348_p6 = scmp.lt.u32.totalorder %s1346_s4, %s1341_s3 }
  0x99   : > { %p1344_p3 = pnand %p1343_p1, %p1342_p8  ;;  %p1350_p0 = scmp.lt.u32.totalorder %s1341_s3, %s1739_s9 }
  0x9a   : > { %p1349_p13 = por %p1348_p6, %p1347_p12 }
  0x9b   : > { %p1345_p11 = pneg %p1344_p3 }
  0x9c   : > { %p1351_p7 = por %p1350_p0, %p1349_p13 }
  0x9e   : > { %p1352_p5 = pnand %p1351_p7, %p1345_p11 }
  0xa0   : > { %1355 = shalt.err (!%p1352_p5)
}
  0xa1   : > { %s1356_s16 = scalar_lea.vmem %s1748_s17, 128  ;;  %s1509_s18 = smov [#allocation6]  }
  0xa2   : > { %p1357_p8 = scmp.ne.s32.totalorder %s1748_s17, %s1356_s16  ;;  %s1361_s10 = sshll.u32 %s1509_s18, 4  ;;  %s1362_s10 = int_to_ptr.vmem [resolvable:$false] %s1361_s10 }
  0xa3   : > { %s1363_s5 = scalar_lea.vmem %s1362_s10, 256  ;;  %p1364_p4 = scmp.lt.s32.totalorder %s1748_s17, %s1362_s10 }
  0xa4   : > { %p1359_p3 = pnand %p1357_p8, %p1343_p1  ;;  %p1365_p12 = scmp.lt.s32.totalorder %s1363_s5, %s1356_s16 }
  0xa6   : > { %p1360_p9 = pneg %p1359_p3  ;;  %p1366_p6 = por %p1365_p12, %p1364_p4 }
  0xa8   : > { %p1367_p13 = pnand %p1366_p6, %p1360_p9 }
  0xaa   : > { %1370 = shalt.err (!%p1367_p13)
}
  0xab   : > { %1142 = dma.hbm_to_vmem [thread:$0]  (!%p1744_p10), %s1739_s9, 128, %s1748_s17, %s281_s2  }
  0xac   : > { %s299_s3 = sand.u32 1, %s1499_s26   ;;  %s303_s4 = scalar_lea.vmem [#allocation9], %s1734_s19 }
  0xad   : > { %s311_s29 = sshll.u32 %s303_s4, 4  ;;  %s300_s20 = scalar_lea.sflag [#allocation10], %s299_s3  ;;  %s312_s29 = int_to_ptr.vmem [resolvable:$true] %s311_s29 }
  0xae   : > { %s1371_s8 = scalar_lea.hbm %s1753_s11, 128  ;;  %s1376_s18 = scalar_lea.hbm %s1917_s1, 256 }
  0xaf   : > { %p1372_p4 = scmp.ne.s32.totalorder %s1753_s11, %s1371_s8  ;;  %p1377_p0 = scmp.lt.u32.totalorder %s1753_s11, %s1917_s1 }
  0xb0   : > { %p1378_p7 = scmp.lt.u32.totalorder %s1376_s18, %s1371_s8  ;;  %p1380_p8 = scmp.lt.u32.totalorder %s1371_s8, %s1753_s11 }
  0xb1   : > { %p1374_p9 = pnand %p1372_p4, %p1343_p1 }
  0xb2   : > { %p1379_p5 = por %p1378_p7, %p1377_p0 }
  0xb3   : > { %p1375_p11 = pneg %p1374_p9 }
  0xb4   : > { %p1381_p3 = por %p1380_p8, %p1379_p5 }
  0xb6   : > { %p1382_p12 = pnand %p1381_p3, %p1375_p11 }
  0xb8   : > { %1385 = shalt.err (!%p1382_p12)
}
  0xb9   : > { %s1386_s2 = scalar_lea.vmem %s312_s29, 128  ;;  %s1510_s19 = smov [#allocation9]  }
  0xba   : > { %p1387_p6 = scmp.ne.s32.totalorder %s312_s29, %s1386_s2  ;;  %s1391_s9 = sshll.u32 %s1510_s19, 4  ;;  %s1392_s9 = int_to_ptr.vmem [resolvable:$false] %s1391_s9 }
  0xbb   : > { %s1393_s17 = scalar_lea.vmem %s1392_s9, 256  ;;  %p1394_p9 = scmp.lt.s32.totalorder %s312_s29, %s1392_s9 }
  0xbc   : > { %p1389_p13 = pnand %p1387_p6, %p1343_p1  ;;  %p1395_p2 = scmp.lt.s32.totalorder %s1393_s17, %s1386_s2 }
  0xbe   : > { %p1390_p4 = pneg %p1389_p13  ;;  %p1396_p0 = por %p1395_p2, %p1394_p9 }
  0xc0   : > { %p1397_p7 = pnand %p1396_p0, %p1390_p4 }
  0xc2   : > { %1400 = shalt.err (!%p1397_p7)
}
  0xc3   : > { %1145 = dma.hbm_to_vmem [thread:$0]  (!%p1744_p10), %s1753_s11, 128, %s312_s29, %s300_s20  }
  0xc4   : > { %p1946_p11 = scmp.ne.s32.totalorder %s1932_s28, 0 }
  0xc5   : > { %s1804_s3 = sand.u32 (!%p1946_p11), 1, %s1483_s22   ;;  %p1947_p2 = scmp.ne.s32.totalorder (!%p1946_p11), %s1942_s12, 0 }
  0xc6   : > { %320 = sbr.rel (%p1946_p11) target bundleno = 1280 (0x500), region = 44  ;;  %s1807_s4 = sshll.u32 (!%p1946_p11), %s1804_s3, 3 }
  0xc7   : > { %s323_s8 = scalar_lea.sflag (!%p1946_p11), [#allocation7], %s1804_s3  ;;  %s326_s30 = scalar_lea.vmem (!%p1946_p11), [#allocation6], %s1807_s4 }
  0xcd   : > { %1454 = dma.done.wait (%p1947_p2), %s323_s8, 128  }
  0xce   : > { %1456 = vsyncadd (%p1947_p2), %s323_s8, 4294967168  ;;  %s331_s28 = sand.u32 1, %s1583_s27   ;;  %s335_s11 = scalar_lea.vmem [#allocation9], %s1807_s4 }
  0xcf   : > { %s332_s7 = scalar_lea.sflag [#allocation10], %s331_s28 }
  0xd0   : > { %1458 = dma.done.wait (%p1947_p2), %s332_s7, 128  }
  0xd1   : > { %1460 = vsyncadd (%p1947_p2), %s332_s7, 4294967168  ;;  %p1948_p10 = scmp.eq.s32.totalorder %s1583_s27, 0 }
  0xd3   : > { %1462 = dma.done.wait (%p1948_p10), [#allocation10], 2048   ;;  %p1949_p1 = pmov %p1948_p10 }
  0xd5   : > { %1464 = vsyncadd (%p1949_p1), [#allocation10], 4294965248  ;;  %p1950_p5 = pmov %p1949_p1 }
  0xd6   : > { %p1951_p8 = pmov %p1949_p1 }
  0xd7   : > { %1466 = dma.done.wait (%p1950_p5), [#allocation13], 4112  }
  0xd8   : > { %1468 = vsyncadd (%p1951_p8), [#allocation13], 4294963184  ;;  %p1952_p3 = pmov %p1949_p1 }
  0xd9   : > { %p1953_p12 = pmov %p1949_p1 }
  0xda   : > { %1470 = dma.done.wait (%p1952_p3), [#allocation16], 32  }
  0xdb   : > { %1472 = vsyncadd (%p1953_p12), [#allocation16], 4294967264  ;;  %v1511_v0 = vmov 0.0|0.0   ;;  %v1512_v1 = vmov 0.0   ;;  %vm1513_vm0 = vmmov 0   ;;  %v490_v2 = vld [vmem:[#allocation14 + $0x8] sm:$0xff] }
  0xdc   : > { %1048 = vmatprep.subr.bf16.mxu0 %v1511_v0  ;;  %597 = vmatprep.mubr.f32.mxu1 %v1512_v1  ;;  %v492_v3 = vld [vmem:[#allocation14 + $0x18] sm:$0xff]  ;;  %v489_v4 = vld [vmem:[#allocation14] sm:$0xff]  ;;  %v491_v6 = vld [vmem:[#allocation14 + $0x10] sm:$0xff]  ;;  %vm484_vm1 = vcmask 7168   ;;  %vm676_vm2 = vcmask 64512   ;;  %s979_s27 = sshll.u32 %s1491_s24, 7 }
  0xdd   : > { %1035 = vmatprep.mubr.msk.f32.mxu0 %vm1513_vm0, %v1512_v1  ;;  %v1072_v5 = vpack.c.bf16 %v492_v3, %v490_v2  ;;  %v390_v7 = vld [vmem:[#allocation11] sm:$0xff]  ;;  %v391_v8 = vld [vmem:[#allocation11 + $0x8] sm:$0xff]  ;;  %v1074_v9 = vpack.c.bf16 %v491_v6, %v489_v4  ;;  %v495_v15 = vld [vmem:[#allocation14 + $0x30] sm:$0xff]  ;;  %486 = vst.msk [vmem:[#allocation4] sm:$0xff] %vm484_vm1, %v1512_v1  ;;  %s384_s12 = scalar_lea.vmem [#allocation17], %s1807_s4  ;;  %s1867_s18 = scalar_lea.hbm %s1922_s6, %s979_s27 }
  0xde   : > { %v1049_v10 = vpack.c.bf16 %v391_v8, %v390_v7  ;;  %v494_v11 = vld [vmem:[#allocation14 + $0x28] sm:$0xff]  ;;  %v496_v12 = vld [vmem:[#allocation14 + $0x38] sm:$0xff]  ;;  %v493_v13 = vld [vmem:[#allocation14 + $0x20] sm:$0xff]  ;;  %s811_s29 = sshll.u32 %s384_s12, 4  ;;  %s797_s10 = scalar_lea.sflag [#allocation8], %s1804_s3  ;;  %s1869_s29 = int_to_ptr.vmem [resolvable:$true] %s811_s29 }
  0xdf   : > { %1073 = vmatprep.subr.bf16.mxu1 %v1072_v5  ;;  %v1076_v14 = vpack.c.bf16 %v496_v12, %v494_v11  ;;  %v392_v16 = vld [vmem:[#allocation11 + $0x10] sm:$0xff]  ;;  %v393_v17 = vld [vmem:[#allocation11 + $0x18] sm:$0xff]  ;;  %v1078_v18 = vpack.c.bf16 %v495_v15, %v493_v13  ;;  %v497_v22 = vld [vmem:[#allocation14 + $0x40] sm:$0xff]  ;;  %s1401_s5 = scalar_lea.vmem %s1869_s29, 128  ;;  %p1954_p13 = scmp.ne.s32.totalorder %s1943_s13, 0 }
  0xe0   : > { %1075 = vmatpush1.bf16.msra.mxu1 %v1074_v9  ;;  %1050 = vmatpush3.bf16.msra.mxu0 %v1049_v10  ;;  %v1052_v19 = vpack.c.bf16 %v393_v17, %v392_v16  ;;  %v498_v20 = vld [vmem:[#allocation14 + $0x48] sm:$0xff]  ;;  %v500_v21 = vld [vmem:[#allocation14 + $0x58] sm:$0xff]  ;;  %v499_v24 = vld [vmem:[#allocation14 + $0x50] sm:$0xff]  ;;  %p1402_p6 = scmp.ne.s32.totalorder %s1869_s29, %s1401_s5  ;;  %s1516_s24 = smov [#allocation17]  }
  0xe1   : > { %1077 = vmatprep.subr.bf16.mxu1 %v1076_v14  ;;  %1051 = vmatprep.subr.bf16.mxu0 %v1511_v0  ;;  %v1080_v23 = vpack.c.bf16 %v500_v21, %v498_v20  ;;  %v394_v25 = vld [vmem:[#allocation11 + $0x20] sm:$0xff]  ;;  %v395_v26 = vld [vmem:[#allocation11 + $0x28] sm:$0xff]  ;;  %v1082_v29 = vpack.c.bf16 %v499_v24, %v497_v22  ;;  %v503_v33 = vld [vmem:[#allocation14 + $0x70] sm:$0xff]  ;;  %v523_v14 = vlaneseq  ;;  %s1405_s2 = sshll.u32 %s1516_s24, 4  ;;  %s1406_s2 = int_to_ptr.vmem [resolvable:$false] %s1405_s2 }
  0xe2   : > { %v502_v27 = vld [vmem:[#allocation14 + $0x68] sm:$0xff]  ;;  %v504_v28 = vld [vmem:[#allocation14 + $0x78] sm:$0xff]  ;;  %v1055_v30 = vpack.c.bf16 %v395_v26, %v394_v25  ;;  %v501_v31 = vld [vmem:[#allocation14 + $0x60] sm:$0xff]  ;;  %p1403_p4 = pnand %p1402_p6, %p1954_p13  ;;  %s1407_s19 = scalar_lea.vmem %s1406_s2, 256 }
  0xe3   : > { %v1084_v32 = vpack.c.bf16 %v504_v28, %v502_v27  ;;  %v396_v34 = vld [vmem:[#allocation11 + $0x30] sm:$0xff]  ;;  %v397_v35 = vld [vmem:[#allocation11 + $0x38] sm:$0xff]  ;;  %v1086_v38 = vpack.c.bf16 %v503_v33, %v501_v31  ;;  %v505_v40 = vld [vmem:[#allocation14 + $0x80] sm:$0xff]  ;;  %v1514_v28 = vmov -inf   ;;  %p1408_p0 = scmp.lt.s32.totalorder %s1869_s29, %s1406_s2  ;;  %p1409_p7 = scmp.lt.s32.totalorder %s1407_s19, %s1401_s5 }
  0xe4   : > { %1079 = vmatpush1.bf16.msra.mxu1 %v1078_v18  ;;  %1053 = vmatpush3.bf16.msra.mxu0 %v1052_v19  ;;  %v506_v36 = vld [vmem:[#allocation14 + $0x88] sm:$0xff]  ;;  %v508_v37 = vld [vmem:[#allocation14 + $0x98] sm:$0xff]  ;;  %v1058_v39 = vpack.c.bf16 %v397_v35, %v396_v34  ;;  %v507_v42 = vld [vmem:[#allocation14 + $0x90] sm:$0xff]  ;;  %485 = vst.msk [vmem:[#allocation3] sm:$0xff] %vm484_vm1, %v1514_v28  ;;  %p1404_p9 = pneg %p1403_p4 }
  0xe5   : > { %1081 = vmatprep.subr.bf16.mxu1 %v1080_v23  ;;  %1054 = vmatprep.subr.bf16.mxu0 %v1511_v0  ;;  %v1088_v41 = vpack.c.bf16 %v508_v37, %v506_v36  ;;  %v398_v43 = vld [vmem:[#allocation11 + $0x40] sm:$0xff]  ;;  %v399_v44 = vld [vmem:[#allocation11 + $0x48] sm:$0xff]  ;;  %v1090_v47 = vpack.c.bf16 %v507_v42, %v505_v40  ;;  %v511_v51 = vld [vmem:[#allocation14 + $0xb0] sm:$0xff]  ;;  %p1410_p11 = por %p1409_p7, %p1408_p0 }
  0xe6   : > { %v510_v45 = vld [vmem:[#allocation14 + $0xa8] sm:$0xff]  ;;  %v512_v46 = vld [vmem:[#allocation14 + $0xb8] sm:$0xff]  ;;  %v1061_v48 = vpack.c.bf16 %v399_v44, %v398_v43  ;;  %v509_v49 = vld [vmem:[#allocation14 + $0xa0] sm:$0xff] }
  0xe7   : > { %v1092_v50 = vpack.c.bf16 %v512_v46, %v510_v45  ;;  %v400_v52 = vld [vmem:[#allocation11 + $0x50] sm:$0xff]  ;;  %v401_v53 = vld [vmem:[#allocation11 + $0x58] sm:$0xff]  ;;  %v1094_v56 = vpack.c.bf16 %v511_v51, %v509_v49  ;;  %v513_v58 = vld [vmem:[#allocation14 + $0xc0] sm:$0xff]  ;;  %p1411_p2 = pnand %p1410_p11, %p1404_p9 }
  0xe8   : > { %1083 = vmatpush1.bf16.msra.mxu1 %v1082_v29  ;;  %1056 = vmatpush3.bf16.msra.mxu0 %v1055_v30  ;;  %v514_v54 = vld [vmem:[#allocation14 + $0xc8] sm:$0xff]  ;;  %v516_v55 = vld [vmem:[#allocation14 + $0xd8] sm:$0xff]  ;;  %v1064_v57 = vpack.c.bf16 %v401_v53, %v400_v52  ;;  %v515_v60 = vld [vmem:[#allocation14 + $0xd0] sm:$0xff] }
  0xe9   : > { %1085 = vmatprep.subr.bf16.mxu1 %v1084_v32  ;;  %1057 = vmatprep.subr.bf16.mxu0 %v1511_v0  ;;  %v1096_v59 = vpack.c.bf16 %v516_v55, %v514_v54  ;;  %v402_v61 = vld [vmem:[#allocation11 + $0x60] sm:$0xff]  ;;  %v403_v62 = vld [vmem:[#allocation11 + $0x68] sm:$0xff]  ;;  %v1098_v3 = vpack.c.bf16 %v515_v60, %v513_v58  ;;  %v519_v7 = vld [vmem:[#allocation14 + $0xf0] sm:$0xff]  ;;  %v1515_v32 = vmov 0  }
  0xea   : > { %v518_v63 = vld [vmem:[#allocation14 + $0xe8] sm:$0xff]  ;;  %v520_v2 = vld [vmem:[#allocation14 + $0xf8] sm:$0xff]  ;;  %v1067_v4 = vpack.c.bf16 %v403_v62, %v402_v61  ;;  %v517_v5 = vld [vmem:[#allocation14 + $0xe0] sm:$0xff]  ;;  %1221 = vset.pattern.permute.xlu0 %v1515_v32  ;;  %1222 = vset.pattern.permute.xlu1 %v1515_v32 }
  0xeb   : > { %v1100_v6 = vpack.c.bf16 %v520_v2, %v518_v63  ;;  %v404_v8 = vld [vmem:[#allocation11 + $0x70] sm:$0xff]  ;;  %v405_v9 = vld [vmem:[#allocation11 + $0x78] sm:$0xff]  ;;  %v1102_v10 = vpack.c.bf16 %v519_v7, %v517_v5  ;;  %v389_v13 = vld [vmem:[%s326_s30] sm:$0xff] }
  0xec   : > { %1087 = vmatpush1.bf16.msra.mxu1 %v1086_v38  ;;  %1059 = vmatpush3.bf16.msra.mxu0 %v1058_v39  ;;  %v1070_v11 = vpack.c.bf16 %v405_v9, %v404_v8  ;;  %v488_v12 = vld [vmem:[%s335_s11] sm:$0xff]  ;;  %v521_v16 = vld [vmem:[#allocation15] sm:$0x3]  ;;  %v976_v20 = vld [vmem:[#allocation12] ss:$0 sm:$0xff] }
  0xed   : > { %1089 = vmatprep.subr.bf16.mxu1 %v1088_v41  ;;  %1060 = vmatprep.subr.bf16.mxu0 %v1511_v0  ;;  %v675_v33 = vld [vmem:[#allocation3] sm:$0xff]  ;;  %v692_v43 = vld [vmem:[#allocation4] sm:$0xff] }
  0xf0   : > { %1091 = vmatpush1.bf16.msra.mxu1 %v1090_v47  ;;  %1062 = vmatpush3.bf16.msra.mxu0 %v1061_v48 }
  0xf1   : > { %1093 = vmatprep.subr.bf16.mxu1 %v1092_v50  ;;  %1063 = vmatprep.subr.bf16.mxu0 %v1511_v0 }
  0xf4   : > { %1095 = vmatpush1.bf16.msra.mxu1 %v1094_v56  ;;  %1065 = vmatpush3.bf16.msra.mxu0 %v1064_v57 }
  0xf5   : > { %1097 = vmatprep.subr.bf16.mxu1 %v1096_v59  ;;  %1066 = vmatprep.subr.bf16.mxu0 %v1511_v0 }
  0xf8   : > { %1099 = vmatpush1.bf16.msra.mxu1 %v1098_v3  ;;  %1068 = vmatpush3.bf16.msra.mxu0 %v1067_v4 }
  0xf9   : > { %1101 = vmatprep.subr.bf16.mxu1 %v1100_v6  ;;  %1069 = vmatprep.subr.bf16.mxu0 %v1511_v0  ;;  %v524_v0 = vshrl.u32 %v523_v14, 7 }
  0xfb   : > { %v525_v15 = vsub.s32 0, %v524_v0  ;;  %v529_v17 = vsub.s32 1, %v524_v0 }
  0xfc   : > { %1103 = vmatpush1.bf16.msra.mxu1 %v1102_v10  ;;  %1071 = vmatpush3.bf16.msra.mxu0 %v1070_v11 }
  0xfd   : > { %1038 = vmatprep.subr.mxu0 %v1512_v1  ;;  %1043 = vmatprep.subr.mxu1 %v1512_v1  ;;  %v526_v18 = vrot.slane %v521_v16, %v525_v15  ;;  %v530_v19 = vrot.slane %v521_v16, %v529_v17 }
  0xff   : > { %598 = vmatmul.mubr.f32.vlgmr.msra.gmra.mrb[0].mxu1 %v488_v12  ;;  %1036 = vmatmul.mubr.f32.vlgmr.msra.gmra.mrb[0].mxu0 %v389_v13 }
 0x100   : > { %1040 = vmatprep.mubr.msk.f32.mxu0 %vm1513_vm0, %v1512_v1  ;;  %1045 = vmatprep.mubr.msk.f32.mxu1 %vm1513_vm0, %v1512_v1 }
 0x1d2   : > { %v599_v21 = vpop.f32.mrb[0].mxu1  ;;  %v479_v22 = vpop.f32.mrb[0].mxu0 }
 0x1d3   : > { %v600_v23 = vadd.f32 %v599_v21, %v526_v18  ;;  %v601_v24 = vpop.f32.mrb[1].mxu1  ;;  %v1037_v25 = vpop.f32.mrb[1].mxu0  ;;  %v480_v27 = vadd.f32 %v976_v20, %v479_v22 }
 0x1d4   : > { %v602_v26 = vadd.f32 %v601_v24, %v530_v19 }
 0x1d5   : > { %1039 = vmatpush3.xpose.msra.mxu0 %v600_v23 }
 0x1d6   : > { %1044 = vmatpush3.msra.mxu1 %v602_v26 }
 0x1d8   : > { %1041 = vmatmul.mubr.f32.vlgmr.msra.gmra.mrb[2].mxu0 %v480_v27 }
 0x2ab   : > { %v671_v29 = vpop.f32.mrb[2].mxu0 }
 0x2ac   : > { %v1042_v30 = vpop.f32.mrb[3].mxu0  ;;  %v677_v31 = vsel %vm676_vm2, %v671_v29, -inf }
 0x2ad   : > { %678 = vmax.xlane.f32.xlu0 %v677_v31 }
 0x33a   : > { %v679_v34 = vpop.xlane.xlu0 %678 }
 0x33b   : > { %v680_v35 = vmax.f32 %v675_v33, %v679_v34 }
 0x33d   : > { %v681_v36 = vsub.f32 %v675_v33, %v680_v35  ;;  %782 = vst.msk [vmem:[#allocation3] sm:$0xff] %vm484_vm1, %v680_v35  ;;  %686 = vperm.xlu0 %1221, %v680_v35  }
 0x33f   : > { %v682_v41 = vmul.f32 1.442695, %v681_v36 }
 0x3bc   : > { %v687_v37 = vpop.permute.xlu0 %686 }
 0x3bd   : > { %v689_v38 = vsub.f32 %v671_v29, %v687_v37 }
 0x3bf   : > { %v690_v39 = vmul.f32 1.442695, %v689_v38 }
 0x3c1   : > { %1223 = vpow2.f32 %v690_v39 }
 0x3c2   : > { %1225 = vpow2.f32 %v682_v41 }
 0x3cb   : > { %v1224_v1 = vpop.eup %1223 }
 0x3cc   : > { %1046 = vmatmul.mubr.msk.f32.vlgmr.msra.gmra.mrb[2].mxu1 %vm676_vm2, %v1224_v1  ;;  %v694_v40 = vsel %vm676_vm2, %v1224_v1, 0.0  ;;  %v1226_v42 = vpop.eup %1225 }
 0x3cd   : > { %695 = vadd.xlane.f32.xlu1 %v694_v40  ;;  %v693_v44 = vmul.f32 %v1226_v42, %v692_v43 }
 0x3de   : > { %703 = vperm.xlu1 %1222, %v1226_v42  }
 0x45a   : > { %v696_v45 = vpop.xlane.xlu1 %695 }
 0x45b   : > { %v697_v46 = vadd.f32 %v696_v45, %v693_v44 }
 0x45d   : > { %699 = vst.msk [vmem:[#allocation4] sm:$0xff] %vm484_vm1, %v697_v46 }
 0x45e   : > { %v704_v51 = vpop.permute.xlu1 %703 }
 0x45f   : > { %v706_v52 = vmul.f32 0.0, %v704_v51 }
 0x464   : > { %v786_v47 = vld [vmem:[#allocation4] sm:$0xff] }
 0x465   : > { %1227 = vrcp.f32 %v786_v47 }
 0x46f   : > { %v1228_v48 = vpop.eup %1227 }
 0x470   : > { %791 = vperm.xlu1 %1222, %v1228_v48  }
 0x49f   : > { %v776_v49 = vpop.f32.mrb[2].mxu1 }
 0x4a0   : > { %v1047_v50 = vpop.f32.mrb[3].mxu1  ;;  %v780_v53 = vadd.f32 %v776_v49, %v706_v52 }
 0x4ef   : > { %v792_v54 = vpop.permute.xlu1 %791 }
 0x4f0   : > { %v794_v55 = vmul.f32 %v792_v54, %v780_v53 }
 0x4f2   : > { %795 = vst [vmem:[%s384_s12] sm:$0xff] %v794_v55 }
 0x4f3   : > { %1414 = shalt.err (!%p1411_p2)
}
 0x4f4   : > { %s1415_s9 = scalar_lea.hbm %s1867_s18, 128  ;;  %s1419_s4 = scalar_lea.hbm %s1922_s6, 256 }
 0x4f5   : > { %p1416_p10 = scmp.ne.s32.totalorder %s1867_s18, %s1415_s9  ;;  %p1420_p8 = scmp.lt.u32.totalorder %s1867_s18, %s1922_s6 }
 0x4f6   : > { %p1421_p3 = scmp.lt.u32.totalorder %s1419_s4, %s1415_s9  ;;  %p1423_p6 = scmp.lt.u32.totalorder %s1415_s9, %s1867_s18 }
 0x4f7   : > { %p1417_p1 = pnand %p1416_p10, %p1954_p13 }
 0x4f8   : > { %p1422_p12 = por %p1421_p3, %p1420_p8 }
 0x4f9   : > { %p1418_p5 = pneg %p1417_p1 }
 0x4fa   : > { %p1424_p4 = por %p1423_p6, %p1422_p12 }
 0x4fc   : > { %p1425_p9 = pnand %p1424_p4, %p1418_p5 }
 0x4fe   : > { %1428 = shalt.err (!%p1425_p9)
}
 0x4ff   : > { %1124 = dma.vmem_to_hbm [thread:$0]  (%p1954_p13), %s1869_s29, 128, %s1867_s18, %s797_s10  }
 0x500 PF: > { %s823_s28 = sand.u32 1, %s1479_s21   ;;  %p1955_p0 = scmp.ne.s32.totalorder %s1944_s15, 0 }
 0x501   : > { %p1956_p7 = scmp.ge.s32.totalorder %s1499_s26, 2  ;;  %s824_s7 = scalar_lea.sflag [#allocation8], %s823_s28 }
 0x503   : > { %p1147_p11 = pnand %p1956_p7, %p1955_p0 }
 0x505   : > { %1474 = dma.done.wait (!%p1147_p11), %s824_s7, 128  }
 0x506   : > { %1476 = vsyncadd (!%p1147_p11), %s824_s7, 4294967168  ;;  %s27_s26 = sadd.s32 1, %s1499_s26   ;;  %s1957_s13 = sld [smem:[#allocation24_spill]] }
 0x507   : > { %p24_p2 = scmp.ge.s32.totalorder %s27_s26, 4   ;;  %s1958_s21 = smov %s1483_s22 }
 0x508   : > { %s1959_s22 = smov %s1487_s23  ;;  %s1960_s23 = smov %s1725_s14 }
 0x509   : > { %s1961_s24 = smov %s1495_s25  ;;  %26 = sbr.rel (!%p24_p2) target bundleno = 15 (0xf), region = 126 }
 0x50c   : > { %s1962_s25 = smov %s1957_s13 }
 0x510   :  { %829 = vsyncpa [#allocation7], 1 }
 0x511   :  { %831 = vsyncpa [#allocation7 + $0x1], 1 }
 0x512   :  { %832 = vsyncpa [#allocation10], 1 }
 0x513   :  { %834 = vsyncpa [#allocation10 + $0x1], 1 }
 0x514   :  { %835 = vsyncpa [#allocation13], 1 }
 0x515   :  { %836 = vsyncpa [#allocation16], 1 }
 0x516   :  { %837 = vsyncpa [#allocation8], 1 }
 0x517   :  { %839 = vsyncpa [#allocation8 + $0x1], 1 }

</bundles_post_ra>
